<compile_context>
chip_gen: v6e
topology: v6e:2x2x1
jax: 0.10.0
libtpu: 0.0.40
codegen_flags: <defaults>
</compile_context>

<pallas_src>
import numpy as np
import jax
import jax.numpy as jnp
from jax import lax
from jax.experimental import pallas as pl
from jax.experimental.pallas import tpu as pltpu


def _round_up(x, m):
    return ((x + m - 1) // m) * m


# ---------------------------------------------------------------------------
# Kernel
# ---------------------------------------------------------------------------
def _bilstm_body(blk_max_ref, lens_ref, x_ref, wih_ref, whh_f_ref, whh_b_ref,
                 b_ref, out_f_ref, out_b_ref, out_sum_ref, xg_scr):
    """Shared body. out_f_ref / out_b_ref are None in the summarize-only variant."""
    blk = pl.program_id(0)
    T = blk_max_ref[blk]                      # longest real segment in this block
    max_len, B, _ = x_ref.shape
    Hp8 = xg_scr.shape[-1]
    Hp4 = Hp8 // 2
    Hp = Hp4 // 4

    # One fused input projection for BOTH directions (single wide MXU matmul):
    #   (max_len*B, I) @ (I, 8*Hp) + bias -> [gates_fwd | gates_bwd]
    # stored once into a single (max_len, B, 8*Hp) scratch; the fwd/bwd halves
    # are 128-lane-aligned views at read time (no extra copy pass).
    x2d = x_ref[...].reshape(max_len * B, x_ref.shape[-1])
    proj = jnp.dot(x2d, wih_ref[...], preferred_element_type=jnp.float32)
    proj = proj + b_ref[...]
    xg_scr[...] = proj.reshape(max_len, B, Hp8).astype(xg_scr.dtype)

    lens_vec = lens_ref[...]                  # (B, 1) int32 per-segment lengths

    def cell(gates, c):
        # PyTorch LSTM gate order i, f, g, o -- each slice is 128-lane aligned.
        i = jax.nn.sigmoid(gates[:, 0 * Hp:1 * Hp])
        f = jax.nn.sigmoid(gates[:, 1 * Hp:2 * Hp])
        g = jnp.tanh(gates[:, 2 * Hp:3 * Hp])
        o = jax.nn.sigmoid(gates[:, 3 * Hp:4 * Hp])
        c_new = f * c + i * g
        h_new = o * jnp.tanh(c_new)
        return h_new, c_new

    def step(s, carry):
        h_f, c_f, h_b, c_b = carry
        t_f = s                  # forward walks 0 .. T-1
        t_b = T - 1 - s          # backward walks T-1 .. 0 (frozen while t_b >= L)

        # Per-direction recurrent matmuls (B,Hp)@(Hp,4*Hp): no h concat on the
        # serial critical path and no zero off-diagonal blocks (the fused
        # block-diagonal form doubles MXU pushes on v5e's 128x128 MXUs).
        rec_f = jnp.dot(h_f.astype(whh_f_ref.dtype), whh_f_ref[...],
                        preferred_element_type=jnp.float32)
        rec_b = jnp.dot(h_b.astype(whh_b_ref.dtype), whh_b_ref[...],
                        preferred_element_type=jnp.float32)

        g_f = xg_scr[t_f, :, 0:Hp4].astype(jnp.float32) + rec_f
        g_b = xg_scr[t_b, :, Hp4:Hp8].astype(jnp.float32) + rec_b
        h_f_new, c_f_new = cell(g_f, c_f)
        h_b_new, c_b_new = cell(g_b, c_b)

        valid_f = t_f < lens_vec              # (B, 1) -> broadcast over Hp lanes
        valid_b = t_b < lens_vec
        h_f = jnp.where(valid_f, h_f_new, h_f)
        c_f = jnp.where(valid_f, c_f_new, c_f)
        h_b = jnp.where(valid_b, h_b_new, h_b)
        c_b = jnp.where(valid_b, c_b_new, c_b)

        if out_f_ref is not None:
            # Lane-dense (B, Hp) tile stores at the true positions; backward
            # writes at t_b directly, so no host-side un-reversing is needed.
            # Rows [T, max_len) are never written (and never read by the host).
            out_f_ref[t_f] = h_f.astype(out_f_ref.dtype)
            out_b_ref[t_b] = h_b.astype(out_b_ref.dtype)
        return (h_f, c_f, h_b, c_b)

    zero = jnp.zeros((B, Hp), jnp.float32)
    h_f, _, h_b, _ = lax.fori_loop(0, T, step, (zero, zero, zero, zero))
    out_sum_ref[:, 0:Hp] = h_f
    out_sum_ref[:, Hp:2 * Hp] = h_b


def _bilstm_seq_kernel(blk_max_ref, lens_ref, x_ref, wih_ref, whh_f_ref,
                       whh_b_ref, b_ref, out_f_ref, out_b_ref, out_sum_ref,
                       xg_scr):
    _bilstm_body(blk_max_ref, lens_ref, x_ref, wih_ref, whh_f_ref, whh_b_ref,
                 b_ref, out_f_ref, out_b_ref, out_sum_ref, xg_scr)


def _bilstm_sum_kernel(blk_max_ref, lens_ref, x_ref, wih_ref, whh_f_ref,
                       whh_b_ref, b_ref, out_sum_ref, xg_scr):
    _bilstm_body(blk_max_ref, lens_ref, x_ref, wih_ref, whh_f_ref, whh_b_ref,
                 b_ref, None, None, out_sum_ref, xg_scr)


# ---------------------------------------------------------------------------
# pallas_call wrapper
# ---------------------------------------------------------------------------
def bilstm_pallas(x_blk, lens_blk, blk_max, wih, whh_f, whh_b, bias, *,
                  emit_seq, vmem_limit_bytes):
    num_blocks, max_len, B, I = x_blk.shape
    Hp = whh_f.shape[0]
    cdt = x_blk.dtype

    in_specs = [
        pl.BlockSpec((None, B, 1), lambda b, bm: (b, 0, 0)),
        pl.BlockSpec((None, max_len, B, I), lambda b, bm: (b, 0, 0, 0)),
        pl.BlockSpec((I, 8 * Hp), lambda b, bm: (0, 0)),
        pl.BlockSpec((Hp, 4 * Hp), lambda b, bm: (0, 0)),
        pl.BlockSpec((Hp, 4 * Hp), lambda b, bm: (0, 0)),
        pl.BlockSpec((1, 8 * Hp), lambda b, bm: (0, 0)),
    ]
    sum_spec = pl.BlockSpec((None, B, 2 * Hp), lambda b, bm: (b, 0, 0))
    sum_shape = jax.ShapeDtypeStruct((num_blocks, B, 2 * Hp), jnp.float32)

    if emit_seq:
        seq_spec = pl.BlockSpec((None, max_len, B, Hp), lambda b, bm: (b, 0, 0, 0))
        seq_shape = jax.ShapeDtypeStruct((num_blocks, max_len, B, Hp), cdt)
        out_specs = (seq_spec, seq_spec, sum_spec)
        out_shape = (seq_shape, seq_shape, sum_shape)
        kernel = _bilstm_seq_kernel
    else:
        # Summarize-only variant: no per-timestep outputs allocated or written.
        out_specs = (sum_spec,)
        out_shape = (sum_shape,)
        kernel = _bilstm_sum_kernel

    grid_spec = pltpu.PrefetchScalarGridSpec(
        num_scalar_prefetch=1,
        grid=(num_blocks,),
        in_specs=in_specs,
        out_specs=out_specs,
        scratch_shapes=[pltpu.VMEM((max_len, B, 8 * Hp), cdt)],
    )
    return pl.pallas_call(
        kernel,
        out_shape=out_shape,
        grid_spec=grid_spec,
        compiler_params=pltpu.CompilerParams(
            dimension_semantics=("parallel",),     # segment blocks are independent
            vmem_limit_bytes=int(vmem_limit_bytes)),
    )(blk_max, lens_blk, x_blk, wih, whh_f, whh_b, bias)


# ---------------------------------------------------------------------------
# Host-side packing / repacking
# ---------------------------------------------------------------------------
_CANDIDATE_B = (8, 16, 32, 64, 128)


def _vmem_need_bytes(B, max_len, I, Hp, emit_seq, itemsize):
    f4 = 4
    need = max_len * B * 8 * Hp * itemsize                 # gate scratch
    need += 2 * max_len * B * I * itemsize                 # x block (double-buffered)
    need += 2 * B * 2 * Hp * f4                            # out_sum block (double-buffered)
    if emit_seq:
        need += 2 * 2 * max_len * B * Hp * itemsize        # out_f + out_b (double-buffered)
    need += 2 * (I * 8 * Hp + 2 * Hp * 4 * Hp) * itemsize  # weights (double-buffered)
    need += 2 * 8 * Hp * f4 + 2 * B * 4                    # bias + lens
    return need


def _choose_block_segments(S, max_len, I, Hp, emit_seq, itemsize, budget):
    best = 8
    for cand in _CANDIDATE_B:
        if _vmem_need_bytes(cand, max_len, I, Hp, emit_seq, itemsize) <= budget:
            best = cand
    # Don't over-pad tiny workloads; keep B a multiple of 8 (sublanes).
    best = min(best, _round_up(max(S, 1), 8))
    return max(best, 8)


def _pack_params(params, input_size, H, Hp):
    """Zero-pad hidden to Hp, build fused fwd|bwd input weights and per-direction
    recurrent weights (every gate slice lands 128-lane aligned)."""
    p = {k: np.asarray(v, np.float32) for k, v in params.items()}
    wih = np.zeros((input_size, 8 * Hp), np.float32)
    whh_f = np.zeros((Hp, 4 * Hp), np.float32)
    whh_b = np.zeros((Hp, 4 * Hp), np.float32)
    bias = np.zeros((1, 8 * Hp), np.float32)
    for d, (wi, wh, bb, whh_dst) in enumerate(
            [("wih_f", "whh_f", "b_f", whh_f), ("wih_b", "whh_b", "b_b", whh_b)]):
        col0 = d * 4 * Hp
        for g in range(4):
            wih[:, col0 + g * Hp: col0 + g * Hp + H] = p[wi][:, g * H:(g + 1) * H]
            whh_dst[:H, g * Hp: g * Hp + H] = p[wh][:, g * H:(g + 1) * H]
            bias[0, col0 + g * Hp: col0 + g * Hp + H] = p[bb][0, g * H:(g + 1) * H]
    return wih, whh_f, whh_b, bias


def bilstm_forward(all_embs, boundaries, params, summarize, *,
                   compute_dtype=jnp.bfloat16, vmem_budget_bytes=32 << 20):
    """Glue: segment gather/pad -> Pallas BiLSTM -> repack (mirrors forward_unbatched)."""
    boundaries = [int(b) for b in boundaries]
    lengths = [r - l for l, r in zip(boundaries, boundaries[1:])]
    S = len(lengths)
    all_np = np.asarray(all_embs, np.float32)
    I = all_np.shape[1]
    H = int(np.asarray(params["whh_f"]).shape[0])
    Hp = _round_up(H, 128)                 # lane-align every gate slice
    max_len = max(max(lengths) if lengths else 1, 1)

    emit_seq = not summarize
    itemsize = jnp.dtype(compute_dtype).itemsize
    B = _choose_block_segments(S, max_len, I, Hp, emit_seq, itemsize,
                               vmem_budget_bytes)
    S_pad = _round_up(max(S, 1), B)
    num_blocks = S_pad // B

    # Bucket segments by length (descending) so each block's serial trip count
    # (its max length) is close to its members' lengths.
    order = sorted(range(S), key=lambda s: -lengths[s])

    # Contiguous per-block slabs: (num_blocks, max_len, B, ...) so each grid
    # step's DMA is one dense region instead of many strided pieces.
    x_blk = np.zeros((num_blocks, max_len, B, I), np.float32)
    lens_blk = np.zeros((num_blocks, B, 1), np.int32)
    for k, s in enumerate(order):
        blk, j = divmod(k, B)
        l, r = boundaries[s], boundaries[s + 1]
        x_blk[blk, :r - l, j, :] = all_np[l:r]
        lens_blk[blk, j, 0] = r - l
    blk_max = lens_blk[:, :, 0].max(axis=1).astype(np.int32)

    wih, whh_f, whh_b, bias = _pack_params(params, I, H, Hp)

    need = _vmem_need_bytes(B, max_len, I, Hp, emit_seq, itemsize)
    vmem_limit = min(max(int(need * 1.3) + (4 << 20), 24 << 20), 96 << 20)

    outs = bilstm_pallas(
        jnp.asarray(x_blk, compute_dtype),
        jnp.asarray(lens_blk),
        jnp.asarray(blk_max),
        jnp.asarray(wih, compute_dtype),
        jnp.asarray(whh_f, compute_dtype),
        jnp.asarray(whh_b, compute_dtype),
        jnp.asarray(bias, jnp.float32),
        emit_seq=emit_seq,
        vmem_limit_bytes=vmem_limit)
    outs = jax.block_until_ready(outs)

    if summarize:
        out_sum = np.asarray(outs[0]).reshape(S_pad, 2 * Hp)
        summaries = np.zeros((S, 2 * H), np.float32)
        for k, s in enumerate(order):
            summaries[s, :H] = out_sum[k, :H]
            summaries[s, H:] = out_sum[k, Hp:Hp + H]
        return jnp.asarray(summaries), list(range(S + 1))

    out_f = np.asarray(outs[0]).astype(np.float32)   # (num_blocks, max_len, B, Hp)
    out_b = np.asarray(outs[1]).astype(np.float32)
    pos = {s: k for k, s in enumerate(order)}
    pieces = []
    for s, L in enumerate(lengths):
        blk, j = divmod(pos[s], B)
        pieces.append(np.concatenate([out_f[blk, :L, j, :H],
                                      out_b[blk, :L, j, :H]], axis=-1))
    return jnp.asarray(np.concatenate(pieces, axis=0)), list(boundaries)


# ------------------------- pure-numpy reference -------------------------
def _sig(x):
    return 1.0 / (1.0 + np.exp(-x))


def _lstm_dir_ref(seg, wih, whh, b, H):
    h = np.zeros(H, np.float32)
    c = np.zeros(H, np.float32)
    outs = []
    for t in range(seg.shape[0]):
        g = seg[t] @ wih + h @ whh + b[0]
        i, f = _sig(g[0:H]), _sig(g[H:2 * H])
        gg, o = np.tanh(g[2 * H:3 * H]), _sig(g[3 * H:4 * H])
        c = f * c + i * gg
        h = o * np.tanh(c)
        outs.append(h.copy())
    return np.stack(outs), h


def _bilstm_ref(all_embs, boundaries, params, summarize):
    H = np.asarray(params["whh_f"]).shape[0]
    p = {k: np.asarray(v) for k, v in params.items()}
    seq_pieces, summaries = [], []
    for l, r in zip(boundaries, boundaries[1:]):
        seg = np.asarray(all_embs)[l:r]
        fwd_seq, h_f = _lstm_dir_ref(seg, p["wih_f"], p["whh_f"], p["b_f"], H)
        bwd_seq, h_b = _lstm_dir_ref(seg[::-1], p["wih_b"], p["whh_b"], p["b_b"], H)
        seq_pieces.append(np.concatenate([fwd_seq, bwd_seq[::-1]], axis=-1))
        summaries.append(np.concatenate([h_f, h_b], axis=-1))
    if summarize:
        return np.stack(summaries)
    return np.concatenate(seq_pieces, axis=0)


if __name__ == "__main__":
    input_size = 16
    output_size = 32              # bidirectional -> hidden per direction H = 16
    H = output_size // 2
    T = 8
    boundaries = [0, 3, 8]        # two segments of length 3 and 5
    dropout = 0.0                 # eval-mode / deterministic

    key = jax.random.PRNGKey(0)
    ks = jax.random.split(key, 7)
    scale = 1.0 / np.sqrt(H)
    params = {
        "wih_f": jax.random.uniform(ks[0], (input_size, 4 * H), jnp.float32, -scale, scale),
        "whh_f": jax.random.uniform(ks[1], (H, 4 * H), jnp.float32, -scale, scale),
        "b_f":   jax.random.uniform(ks[2], (1, 4 * H), jnp.float32, -scale, scale),
        "wih_b": jax.random.uniform(ks[3], (input_size, 4 * H), jnp.float32, -scale, scale),
        "whh_b": jax.random.uniform(ks[4], (H, 4 * H), jnp.float32, -scale, scale),
        "b_b":   jax.random.uniform(ks[5], (1, 4 * H), jnp.float32, -scale, scale),
    }
    all_embs = jax.random.normal(ks[6], (T, input_size), jnp.float32)

    # (1) f32 compute path: exact algorithm check, tight tolerance.
    for summarize in (True, False):
        out, nb = bilstm_forward(all_embs, boundaries, params, summarize,
                                 compute_dtype=jnp.float32)
        out = np.asarray(jax.block_until_ready(out))
        ref = _bilstm_ref(all_embs, boundaries, params, summarize)
        np.testing.assert_allclose(out, ref, rtol=1e-4, atol=1e-4)
        assert nb == ([0, 1, 2] if summarize else boundaries)

    # (2) bf16 production path (default): same kernel with bf16 MXU inputs,
    # gate scratch and per-step outputs; looser tolerance for bf16 rounding.
    for summarize in (True, False):
        out, nb = bilstm_forward(all_embs, boundaries, params, summarize)
        out = np.asarray(jax.block_until_ready(out))
        ref = _bilstm_ref(all_embs, boundaries, params, summarize)
        np.testing.assert_allclose(out, ref, rtol=5e-2, atol=5e-2)
        assert nb == ([0, 1, 2] if summarize else boundaries)

    print("KERNEL_OK")
</pallas_src>

<mosaic_0001>
module attributes {stable_mosaic.version = 11 : i64} {
  func.func @_bilstm_sum_kernel(%arg0: i32, %arg1: memref<1xi32, #tpu.memory_space<smem>>, %arg2: memref<1x8x1xi32, #tpu.memory_space<vmem>>, %arg3: memref<1x5x8x16xf32, #tpu.memory_space<vmem>>, %arg4: memref<16x1024xf32, #tpu.memory_space<vmem>>, %arg5: memref<128x512xf32, #tpu.memory_space<vmem>>, %arg6: memref<128x512xf32, #tpu.memory_space<vmem>>, %arg7: memref<1x1024xf32, #tpu.memory_space<vmem>>, %arg8: memref<1x8x256xf32, #tpu.memory_space<vmem>>, %arg9: memref<5x8x1024xf32, #tpu.memory_space<vmem>>) attributes {dimension_semantics = [#tpu.dimension_semantics<parallel>], iteration_bounds = array<i64: 1>, scalar_prefetch = 1 : i64, scratch_operands = 1 : i64, tpu.core_type = #tpu.core_type<tc>, window_params = [{transform_indices = @transform_0, window_bounds = array<i64: 1, 8, 1>}, {transform_indices = @transform_1, window_bounds = array<i64: 1, 5, 8, 16>}, {pipeline_mode = #tpu.pipeline_mode<synchronous>, transform_indices = @transform_2, window_bounds = array<i64: 16, 1024>}, {pipeline_mode = #tpu.pipeline_mode<synchronous>, transform_indices = @transform_3, window_bounds = array<i64: 128, 512>}, {pipeline_mode = #tpu.pipeline_mode<synchronous>, transform_indices = @transform_4, window_bounds = array<i64: 128, 512>}, {pipeline_mode = #tpu.pipeline_mode<synchronous>, transform_indices = @transform_5, window_bounds = array<i64: 1, 1024>}, {transform_indices = @transform_6, window_bounds = array<i64: 1, 8, 256>}]} {
    %0 = arith.index_cast %arg0 : i32 to index
    %1 = memref.load %arg1[%0] : memref<1xi32, #tpu.memory_space<smem>>
    %c0 = arith.constant 0 : index
    %c0_0 = arith.constant 0 : index
    %c0_1 = arith.constant 0 : index
    %c0_2 = arith.constant 0 : index
    %2 = vector.load %arg3[%c0, %c0_0, %c0_1, %c0_2] : memref<1x5x8x16xf32, #tpu.memory_space<vmem>>, vector<1x5x8x16xf32>
    %3 = vector.shape_cast %2 : vector<1x5x8x16xf32> to vector<5x8x16xf32>
    %4 = vector.shape_cast %3 : vector<5x8x16xf32> to vector<40x16xf32>
    %c0_3 = arith.constant 0 : index
    %c0_4 = arith.constant 0 : index
    %5 = vector.load %arg4[%c0_3, %c0_4] : memref<16x1024xf32, #tpu.memory_space<vmem>>, vector<16x1024xf32>
    %cst = arith.constant dense<0.000000e+00> : vector<40x1024xf32>
    %6 = tpu.matmul %4, %5, %cst {dimension_numbers = #tpu.dot_dimension_numbers<[1], [0], [0], [1], [0, 0, 1, 1], [], []>} : vector<40x16xf32>, vector<16x1024xf32>, vector<40x1024xf32> -> vector<40x1024xf32>
    %c0_5 = arith.constant 0 : index
    %c0_6 = arith.constant 0 : index
    %7 = vector.load %arg7[%c0_5, %c0_6] : memref<1x1024xf32, #tpu.memory_space<vmem>>, vector<1x1024xf32>
    %8 = vector.broadcast %7 : vector<1x1024xf32> to vector<40x1024xf32>
    %9 = arith.addf %6, %8 : vector<40x1024xf32>
    %10 = vector.shape_cast %9 : vector<40x1024xf32> to vector<5x8x1024xf32>
    %c0_7 = arith.constant 0 : index
    %c0_8 = arith.constant 0 : index
    %c0_9 = arith.constant 0 : index
    %11 = vector.load %arg9[%c0_7, %c0_8, %c0_9] : memref<5x8x1024xf32, #tpu.memory_space<vmem>>, vector<5x8x1024xf32>
    tpu.vector_store %arg9[%c0_7, %c0_8, %c0_9], %10 {strides = array<i32>} : memref<5x8x1024xf32, #tpu.memory_space<vmem>>, vector<5x8x1024xf32>,
    %c0_10 = arith.constant 0 : index
    %c0_11 = arith.constant 0 : index
    %c0_12 = arith.constant 0 : index
    %12 = vector.load %arg2[%c0_10, %c0_11, %c0_12] : memref<1x8x1xi32, #tpu.memory_space<vmem>>, vector<1x8x1xi32>
    %13 = vector.shape_cast %12 : vector<1x8x1xi32> to vector<8x1xi32>
    %cst_13 = arith.constant 0.000000e+00 : f32
    %14 = vector.broadcast %cst_13 : f32 to vector<8x128xf32>
    %c0_i32 = arith.constant 0 : i32
    %15 = arith.subi %1, %c0_i32 : i32
    %16 = arith.addi %c0_i32, %15 : i32
    %c1_i32 = arith.constant 1 : i32
    %17:4 = scf.for %arg10 = %c0_i32 to %16 step %c1_i32 iter_args(%arg11 = %14, %arg12 = %14, %arg13 = %14, %arg14 = %14) -> (vector<8x128xf32>, vector<8x128xf32>, vector<8x128xf32>, vector<8x128xf32>)  : i32 {
      %c1_i32_19 = arith.constant 1 : i32
      %24 = arith.subi %1, %c1_i32_19 : i32
      %25 = arith.subi %24, %arg10 : i32
      %c0_20 = arith.constant 0 : index
      %c0_21 = arith.constant 0 : index
      %26 = vector.load %arg5[%c0_20, %c0_21] : memref<128x512xf32, #tpu.memory_space<vmem>>, vector<128x512xf32>
      %cst_22 = arith.constant dense<0.000000e+00> : vector<8x512xf32>
      %27 = tpu.matmul %arg11, %26, %cst_22 {dimension_numbers = #tpu.dot_dimension_numbers<[1], [0], [0], [1], [0, 0, 1, 1], [], []>} : vector<8x128xf32>, vector<128x512xf32>, vector<8x512xf32> -> vector<8x512xf32>
      %c0_23 = arith.constant 0 : index
      %c0_24 = arith.constant 0 : index
      %28 = vector.load %arg6[%c0_23, %c0_24] : memref<128x512xf32, #tpu.memory_space<vmem>>, vector<128x512xf32>
      %cst_25 = arith.constant dense<0.000000e+00> : vector<8x512xf32>
      %29 = tpu.matmul %arg13, %28, %cst_25 {dimension_numbers = #tpu.dot_dimension_numbers<[1], [0], [0], [1], [0, 0, 1, 1], [], []>} : vector<8x128xf32>, vector<128x512xf32>, vector<8x512xf32> -> vector<8x512xf32>
      %30 = arith.index_cast %arg10 : i32 to index
      %c0_26 = arith.constant 0 : index
      %c0_27 = arith.constant 0 : index
      %31 = vector.load %arg9[%30, %c0_26, %c0_27] : memref<5x8x1024xf32, #tpu.memory_space<vmem>>, vector<1x8x512xf32>
      %32 = vector.shape_cast %31 : vector<1x8x512xf32> to vector<8x512xf32>
      %33 = arith.addf %32, %27 : vector<8x512xf32>
      %34 = arith.index_cast %25 : i32 to index
      %c0_28 = arith.constant 0 : index
      %c512 = arith.constant 512 : index
      %35 = vector.load %arg9[%34, %c0_28, %c512] : memref<5x8x1024xf32, #tpu.memory_space<vmem>>, vector<1x8x512xf32>
      %36 = vector.shape_cast %35 : vector<1x8x512xf32> to vector<8x512xf32>
      %37 = arith.addf %36, %29 : vector<8x512xf32>
      %38 = vector.extract_strided_slice %33 {offsets = [0, 0], sizes = [8, 128], strides = [1, 1]} : vector<8x512xf32> to vector<8x128xf32>
      %39 = arith.negf %38 : vector<8x128xf32>
      %40 = math.exp %39 : vector<8x128xf32>
      %cst_29 = arith.constant 1.000000e+00 : f32
      %41 = vector.broadcast %cst_29 : f32 to vector<8x128xf32>
      %42 = arith.addf %41, %40 : vector<8x128xf32>
      %43 = arith.divf %41, %42 : vector<8x128xf32>
      %44 = vector.extract_strided_slice %33 {offsets = [0, 128], sizes = [8, 128], strides = [1, 1]} : vector<8x512xf32> to vector<8x128xf32>
      %45 = arith.negf %44 : vector<8x128xf32>
      %46 = math.exp %45 : vector<8x128xf32>
      %cst_30 = arith.constant 1.000000e+00 : f32
      %47 = vector.broadcast %cst_30 : f32 to vector<8x128xf32>
      %48 = arith.addf %47, %46 : vector<8x128xf32>
      %49 = arith.divf %47, %48 : vector<8x128xf32>
      %50 = vector.extract_strided_slice %33 {offsets = [0, 256], sizes = [8, 128], strides = [1, 1]} : vector<8x512xf32> to vector<8x128xf32>
      %51 = math.tanh %50 : vector<8x128xf32>
      %52 = vector.extract_strided_slice %33 {offsets = [0, 384], sizes = [8, 128], strides = [1, 1]} : vector<8x512xf32> to vector<8x128xf32>
      %53 = arith.negf %52 : vector<8x128xf32>
      %54 = math.exp %53 : vector<8x128xf32>
      %cst_31 = arith.constant 1.000000e+00 : f32
      %55 = vector.broadcast %cst_31 : f32 to vector<8x128xf32>
      %56 = arith.addf %55, %54 : vector<8x128xf32>
      %57 = arith.divf %55, %56 : vector<8x128xf32>
      %58 = arith.mulf %49, %arg12 : vector<8x128xf32>
      %59 = arith.mulf %43, %51 : vector<8x128xf32>
      %60 = arith.addf %58, %59 : vector<8x128xf32>
      %61 = math.tanh %60 : vector<8x128xf32>
      %62 = arith.mulf %57, %61 : vector<8x128xf32>
      %63 = vector.extract_strided_slice %37 {offsets = [0, 0], sizes = [8, 128], strides = [1, 1]} : vector<8x512xf32> to vector<8x128xf32>
      %64 = arith.negf %63 : vector<8x128xf32>
      %65 = math.exp %64 : vector<8x128xf32>
      %cst_32 = arith.constant 1.000000e+00 : f32
      %66 = vector.broadcast %cst_32 : f32 to vector<8x128xf32>
      %67 = arith.addf %66, %65 : vector<8x128xf32>
      %68 = arith.divf %66, %67 : vector<8x128xf32>
      %69 = vector.extract_strided_slice %37 {offsets = [0, 128], sizes = [8, 128], strides = [1, 1]} : vector<8x512xf32> to vector<8x128xf32>
      %70 = arith.negf %69 : vector<8x128xf32>
      %71 = math.exp %70 : vector<8x128xf32>
      %cst_33 = arith.constant 1.000000e+00 : f32
      %72 = vector.broadcast %cst_33 : f32 to vector<8x128xf32>
      %73 = arith.addf %72, %71 : vector<8x128xf32>
      %74 = arith.divf %72, %73 : vector<8x128xf32>
      %75 = vector.extract_strided_slice %37 {offsets = [0, 256], sizes = [8, 128], strides = [1, 1]} : vector<8x512xf32> to vector<8x128xf32>
      %76 = math.tanh %75 : vector<8x128xf32>
      %77 = vector.extract_strided_slice %37 {offsets = [0, 384], sizes = [8, 128], strides = [1, 1]} : vector<8x512xf32> to vector<8x128xf32>
      %78 = arith.negf %77 : vector<8x128xf32>
      %79 = math.exp %78 : vector<8x128xf32>
      %cst_34 = arith.constant 1.000000e+00 : f32
      %80 = vector.broadcast %cst_34 : f32 to vector<8x128xf32>
      %81 = arith.addf %80, %79 : vector<8x128xf32>
      %82 = arith.divf %80, %81 : vector<8x128xf32>
      %83 = arith.mulf %74, %arg14 : vector<8x128xf32>
      %84 = arith.mulf %68, %76 : vector<8x128xf32>
      %85 = arith.addf %83, %84 : vector<8x128xf32>
      %86 = math.tanh %85 : vector<8x128xf32>
      %87 = arith.mulf %82, %86 : vector<8x128xf32>
      %88 = vector.broadcast %arg10 : i32 to vector<8x1xi32>
      %89 = arith.cmpi slt, %88, %13 : vector<8x1xi32>
      %90 = vector.broadcast %25 : i32 to vector<8x1xi32>
      %91 = arith.cmpi slt, %90, %13 : vector<8x1xi32>
      %92 = vector.shape_cast %89 : vector<8x1xi1> to vector<8x1xi1>
      %93 = vector.broadcast %92 : vector<8x1xi1> to vector<8x128xi1>
      %94 = arith.select %93, %62, %arg11 : vector<8x128xi1>, vector<8x128xf32>
      %95 = vector.shape_cast %89 : vector<8x1xi1> to vector<8x1xi1>
      %96 = vector.broadcast %95 : vector<8x1xi1> to vector<8x128xi1>
      %97 = arith.select %96, %60, %arg12 : vector<8x128xi1>, vector<8x128xf32>
      %98 = vector.shape_cast %91 : vector<8x1xi1> to vector<8x1xi1>
      %99 = vector.broadcast %98 : vector<8x1xi1> to vector<8x128xi1>
      %100 = arith.select %99, %87, %arg13 : vector<8x128xi1>, vector<8x128xf32>
      %101 = vector.shape_cast %91 : vector<8x1xi1> to vector<8x1xi1>
      %102 = vector.broadcast %101 : vector<8x1xi1> to vector<8x128xi1>
      %103 = arith.select %102, %85, %arg14 : vector<8x128xi1>, vector<8x128xf32>
      scf.yield %94, %97, %100, %103 : vector<8x128xf32>, vector<8x128xf32>, vector<8x128xf32>, vector<8x128xf32>
    }
    %c0_14 = arith.constant 0 : index
    %c0_15 = arith.constant 0 : index
    %c0_16 = arith.constant 0 : index
    %18 = vector.load %arg8[%c0_14, %c0_15, %c0_16] : memref<1x8x256xf32, #tpu.memory_space<vmem>>, vector<1x8x128xf32>
    %19 = vector.shape_cast %18 : vector<1x8x128xf32> to vector<8x128xf32>
    %20 = vector.shape_cast %17#0 : vector<8x128xf32> to vector<1x8x128xf32>
    tpu.vector_store %arg8[%c0_14, %c0_15, %c0_16], %20 {strides = array<i32>} : memref<1x8x256xf32, #tpu.memory_space<vmem>>, vector<1x8x128xf32>,
    %c0_17 = arith.constant 0 : index
    %c0_18 = arith.constant 0 : index
    %c128 = arith.constant 128 : index
    %21 = vector.load %arg8[%c0_17, %c0_18, %c128] : memref<1x8x256xf32, #tpu.memory_space<vmem>>, vector<1x8x128xf32>
    %22 = vector.shape_cast %21 : vector<1x8x128xf32> to vector<8x128xf32>
    %23 = vector.shape_cast %17#2 : vector<8x128xf32> to vector<1x8x128xf32>
    tpu.vector_store %arg8[%c0_17, %c0_18, %c128], %23 {strides = array<i32>} : memref<1x8x256xf32, #tpu.memory_space<vmem>>, vector<1x8x128xf32>,
    return
  }
  func.func @transform_0(%arg0: i32, %arg1: memref<1xi32, #tpu.memory_space<smem>>) -> (i32, i32, i32) {
    %c0_i32 = arith.constant 0 : i32
    %c0_i32_0 = arith.constant 0 : i32
    %c0_i32_1 = arith.constant 0 : i32
    return %arg0, %c0_i32, %c0_i32_0 : i32, i32, i32
  }
  func.func @transform_1(%arg0: i32, %arg1: memref<1xi32, #tpu.memory_space<smem>>) -> (i32, i32, i32, i32) {
    %c0_i32 = arith.constant 0 : i32
    %c0_i32_0 = arith.constant 0 : i32
    %c0_i32_1 = arith.constant 0 : i32
    %c0_i32_2 = arith.constant 0 : i32
    return %arg0, %c0_i32, %c0_i32_0, %c0_i32_1 : i32, i32, i32, i32
  }
  func.func @transform_2(%arg0: i32, %arg1: memref<1xi32, #tpu.memory_space<smem>>) -> (i32, i32) {
    %c0_i32 = arith.constant 0 : i32
    %c0_i32_0 = arith.constant 0 : i32
    %c0_i32_1 = arith.constant 0 : i32
    return %c0_i32, %c0_i32_0 : i32, i32
  }
  func.func @transform_3(%arg0: i32, %arg1: memref<1xi32, #tpu.memory_space<smem>>) -> (i32, i32) {
    %c0_i32 = arith.constant 0 : i32
    %c0_i32_0 = arith.constant 0 : i32
    %c0_i32_1 = arith.constant 0 : i32
    return %c0_i32, %c0_i32_0 : i32, i32
  }
  func.func @transform_4(%arg0: i32, %arg1: memref<1xi32, #tpu.memory_space<smem>>) -> (i32, i32) {
    %c0_i32 = arith.constant 0 : i32
    %c0_i32_0 = arith.constant 0 : i32
    %c0_i32_1 = arith.constant 0 : i32
    return %c0_i32, %c0_i32_0 : i32, i32
  }
  func.func @transform_5(%arg0: i32, %arg1: memref<1xi32, #tpu.memory_space<smem>>) -> (i32, i32) {
    %c0_i32 = arith.constant 0 : i32
    %c0_i32_0 = arith.constant 0 : i32
    %c0_i32_1 = arith.constant 0 : i32
    return %c0_i32, %c0_i32_0 : i32, i32
  }
  func.func @transform_6(%arg0: i32, %arg1: memref<1xi32, #tpu.memory_space<smem>>) -> (i32, i32, i32) {
    %c0_i32 = arith.constant 0 : i32
    %c0_i32_0 = arith.constant 0 : i32
    %c0_i32_1 = arith.constant 0 : i32
    return %arg0, %c0_i32, %c0_i32_0 : i32, i32, i32
  }
}

</mosaic_0001>

<bundles_post_ra>
// kernel: tpu_custom_call.1
= control target key start
LH: loop header
LB: loop body
LE: loop exit
PB: predicated region body
PF: predicated region fallthrough
CT: control target
= control target key end

     0   :  { %13 = vsyncpa [#allocation6], 0  ;;  %s1669_s0 = inlined_call_operand.<no memory space> [shape: s32[1], index: 0, kind: input, shape index: {}]   ;;  %s1670_s1 = inlined_call_operand.vmem [shape: s32[1,8,1], index: 1, kind: input, shape index: {}]   ;;  %s1671_s2 = inlined_call_operand.hbm [shape: f32[1,5,8,16], index: 2, kind: input, shape index: {}]   ;;  %s1672_s3 = inlined_call_operand.hbm [shape: f32[16,1024], index: 3, kind: input, shape index: {}]   ;;  %s1673_s4 = inlined_call_operand.hbm [shape: f32[128,512], index: 4, kind: input, shape index: {}]   ;;  %s1674_s5 = inlined_call_operand.hbm [shape: f32[128,512], index: 5, kind: input, shape index: {}]   ;;  %s1675_s6 = inlined_call_operand.vmem [shape: f32[1,1024], index: 6, kind: input, shape index: {}]   ;;  %s1676_s7 = inlined_call_operand.hbm [shape: f32[1,8,256], index: 7, kind: output, shape index: {}]  }
   0x1   :  { %14 = vsyncpa [#allocation9], 0 }
   0x2   :  { %15 = vsyncpa [#allocation12], 0 }
   0x3   :  { %16 = vsyncpa [#allocation7], 0  ;;  %s1435_s24 = smov [#allocation8]  }
   0x4   :  { %s36_s25 = sshll.u32 %s1435_s24, 4  ;;  %s37_s25 = int_to_ptr.vmem [resolvable:$true] %s36_s25 }
   0x5   :  { %s1279_s26 = scalar_lea.vmem %s37_s25, 2048  ;;  %p1284_p1 = scmp.lt.s32.totalorder %s37_s25, %s37_s25 }
   0x6   :  { %p1280_p0 = scmp.ne.s32.totalorder %s37_s25, %s1279_s26  ;;  %p1285_p2 = scmp.lt.s32.totalorder %s1279_s26, %s1279_s26 }
   0x8   :  { %p1286_p3 = por %p1285_p2, %p1284_p1 }
   0xa   :  { %p1287_p4 = pnand %p1286_p3, %p1280_p0 }
   0xc   :  { %1290 = shalt.err (!%p1287_p4)
}
   0xd   :  { %s1436_s27 = smov 1024   ;;  %s1437_s28 = smov 64  }
   0xe   :  { %42 = dma.hbm_to_vmem [thread:$0]  %s1672_s3, 2048, %s37_s25, [#allocation9], %s1436_s27, %s1436_s27, %s1437_s28  }
   0xf   :  { %s1438_s8 = smov [#allocation5]  }
  0x10   :  { %s24_s9 = sshll.u32 %s1438_s8, 4  ;;  %s25_s9 = int_to_ptr.vmem [resolvable:$true] %s24_s9 }
  0x11   :  { %s1299_s10 = scalar_lea.vmem %s25_s9, 640  ;;  %p1304_p6 = scmp.lt.s32.totalorder %s25_s9, %s25_s9 }
  0x12   :  { %p1300_p5 = scmp.ne.s32.totalorder %s25_s9, %s1299_s10  ;;  %p1305_p7 = scmp.lt.s32.totalorder %s1299_s10, %s1299_s10 }
  0x14   :  { %p1306_p8 = por %p1305_p7, %p1304_p6 }
  0x16   :  { %p1307_p9 = pnand %p1306_p8, %p1300_p5 }
  0x18   :  { %1310 = shalt.err (!%p1307_p9)
}
  0x19   :  { %s1439_s11 = smov 128   ;;  %s1440_s12 = smov 8  }
  0x1a   :  { %30 = dma.hbm_to_vmem [thread:$0]  %s1671_s2, 640, %s25_s9, [#allocation6], %s1439_s11, %s1439_s11, %s1440_s12  }
  0x1b   :  { %s1441_s15 = smov [#allocation10]  }
  0x1c   :  { %s48_s16 = sshll.u32 %s1441_s15, 4  ;;  %s49_s16 = int_to_ptr.vmem [resolvable:$true] %s48_s16 }
  0x1d   :  { %s1319_s3 = scalar_lea.vmem %s49_s16, 8192  ;;  %p1324_p11 = scmp.lt.s32.totalorder %s49_s16, %s49_s16 }
  0x1e   :  { %p1320_p10 = scmp.ne.s32.totalorder %s49_s16, %s1319_s3  ;;  %p1325_p12 = scmp.lt.s32.totalorder %s1319_s3, %s1319_s3 }
  0x20   :  { %p1326_p13 = por %p1325_p12, %p1324_p11 }
  0x22   :  { %p1327_p0 = pnand %p1326_p13, %p1320_p10 }
  0x24   :  { %1330 = shalt.err (!%p1327_p0)
}
  0x25   :  { %s1442_s17 = smov 512   ;;  %s1443_s18 = smov 32  }
  0x26   :  { %54 = dma.hbm_to_vmem [thread:$0]  %s1673_s4, 8192, %s49_s16, [#allocation9], %s1442_s17, %s1442_s17, %s1443_s18  }
  0x27   :  { %s1444_s21 = smov [#allocation11]  }
  0x28   :  { %s60_s22 = sshll.u32 %s1444_s21, 4  ;;  %s61_s22 = int_to_ptr.vmem [resolvable:$true] %s60_s22 }
  0x29   :  { %s1339_s2 = scalar_lea.vmem %s61_s22, 8192  ;;  %p1344_p2 = scmp.lt.s32.totalorder %s61_s22, %s61_s22 }
  0x2a   :  { %p1340_p1 = scmp.ne.s32.totalorder %s61_s22, %s1339_s2  ;;  %p1345_p3 = scmp.lt.s32.totalorder %s1339_s2, %s1339_s2 }
  0x2c   :  { %p1346_p4 = por %p1345_p3, %p1344_p2 }
  0x2e   :  { %p1347_p5 = pnand %p1346_p4, %p1340_p1 }
  0x30   :  { %1350 = shalt.err (!%p1347_p5)
}
  0x31   :  { %66 = dma.hbm_to_vmem [thread:$0]  %s1674_s5, 8192, %s61_s22, [#allocation12], %s1442_s17, %s1442_s17, %s1443_s18  }
  0x32   :  { %1399 = dma.done.wait [#allocation6], 640  }
  0x33   :  { %1400 = vsyncadd [#allocation6], 4294966656 }
  0x34   :  { %1401 = dma.done.wait [#allocation9], 10240  }
  0x35   :  { %1402 = vsyncadd [#allocation9], 4294957056 }
  0x36   :  { %1403 = dma.done.wait [#allocation12], 8192  }
  0x37   :  { %1404 = vsyncadd [#allocation12], 4294959104  ;;  %v1445_v0 = vmov 0.0   ;;  %v1506_v1 = vld [vmem:[%s1670_s1] sm:$0xff]  ;;  %v96_v2 = vld [vmem:[#allocation8 + $0x48] sm:$0xff]  ;;  %vm145_vm0 = vcmask 130048   ;;  %v105_v23 = vlaneseq }
  0x38   :  { %225 = vmatprep.mubr.f32.mxu0 %v1445_v0  ;;  %320 = vmatprep.mubr.f32.mxu1 %v1445_v0  ;;  %v98_v3 = vld [vmem:[#allocation8 + $0x58] sm:$0xff]  ;;  %v95_v4 = vld [vmem:[#allocation8 + $0x40] sm:$0xff]  ;;  %v97_v5 = vld [vmem:[#allocation8 + $0x50] sm:$0xff]  ;;  %p1154_p6 = scmp.le.s32.totalorder %s1669_s0, 0 }
  0x39   :  { %189 = vmatprep.subr.mxu0 %v96_v2  ;;  %284 = vmatprep.subr.mxu1 %v98_v3  ;;  %v88_v6 = vld [vmem:[#allocation8 + $0x8] sm:$0xff]  ;;  %v90_v7 = vld [vmem:[#allocation8 + $0x18] sm:$0xff]  ;;  %v87_v8 = vld [vmem:[#allocation8] sm:$0xff]  ;;  %v1546_v24 = vshrl.u32 %v105_v23, 7  ;;  %s1598_s27 = smov (!%p1154_p6), 0  }
  0x3a   :  { %190 = vmatpush1.msra.mxu0 %v95_v4  ;;  %285 = vmatpush1.msra.mxu1 %v97_v5  ;;  %v89_v9 = vld [vmem:[#allocation8 + $0x10] sm:$0xff]  ;;  %v82_v10 = vld [vmem:[#allocation5] sm:$0xff]  ;;  %v100_v11 = vld [vmem:[#allocation8 + $0x68] sm:$0xff] }
  0x3b   :  { %191 = vmatprep.subr.mxu0 %v88_v6  ;;  %286 = vmatprep.subr.mxu1 %v90_v7  ;;  %v102_v12 = vld [vmem:[#allocation8 + $0x78] sm:$0xff]  ;;  %v99_v13 = vld [vmem:[#allocation8 + $0x60] sm:$0xff]  ;;  %v101_v14 = vld [vmem:[#allocation8 + $0x70] sm:$0xff]  ;;  %v107_v25 = vsub.s32 0, %v1546_v24  ;;  %v115_v26 = vsub.s32 2, %v1546_v24  ;;  %v111_v28 = vsub.s32 1, %v1546_v24 }
  0x3c   :  { %192 = vmatpush1.msra.mxu0 %v87_v8  ;;  %287 = vmatpush1.msra.mxu1 %v89_v9  ;;  %v83_v15 = vld [vmem:[#allocation5 + $0x8] sm:$0xff]  ;;  %v92_v16 = vld [vmem:[#allocation8 + $0x28] sm:$0xff]  ;;  %v94_v17 = vld [vmem:[#allocation8 + $0x38] sm:$0xff]  ;;  %v119_v29 = vsub.s32 3, %v1546_v24  ;;  %v123_v62 = vsub.s32 4, %v1546_v24  ;;  %v131_v63 = vsub.s32 6, %v1546_v24 }
  0x3d   :  { %1134 = vmatmul.mubr.msk.f32.vlgmr.msra.gmra.mxu0 %vm145_vm0, %v82_v10  ;;  %1139 = vmatmul.mubr.msk.f32.vlgmr.msra.gmra.mxu1 %vm145_vm0, %v82_v10  ;;  %v91_v18 = vld [vmem:[#allocation8 + $0x20] sm:$0xff]  ;;  %v93_v19 = vld [vmem:[#allocation8 + $0x30] sm:$0xff]  ;;  %v84_v20 = vld [vmem:[#allocation5 + $0x10] sm:$0xff]  ;;  %v127_v5 = vsub.s32 5, %v1546_v24  ;;  %v135_v6 = vsub.s32 7, %v1546_v24 }
  0x3e   :  { %379 = vmatprep.subr.mxu0 %v100_v11  ;;  %474 = vmatprep.subr.mxu1 %v102_v12  ;;  %v85_v21 = vld [vmem:[#allocation5 + $0x18] sm:$0xff]  ;;  %v86_v22 = vld [vmem:[#allocation5 + $0x20] sm:$0xff] }
  0x3f   :  { %380 = vmatpush1.msra.mxu0 %v99_v13  ;;  %475 = vmatpush1.msra.mxu1 %v101_v14  ;;  %v1553_v27 = vld [vmem:[%s1675_s6] sm:$0xff] }
  0x40   :  { %231 = vmatprep.mubr.f32.mxu0 %v1445_v0  ;;  %326 = vmatprep.mubr.f32.mxu1 %v1445_v0  ;;  %v108_v30 = vrot.slane %v1553_v27, %v107_v25  ;;  %v116_v31 = vrot.slane %v1553_v27, %v115_v26  ;;  %v1560_v32 = vrot.slane %v1553_v27, %v111_v28 }
  0x41   :  { %1135 = vmatmul.mubr.msk.f32.gmra.mxu0 %vm145_vm0, %v83_v15  ;;  %1140 = vmatmul.mubr.msk.f32.gmra.mxu1 %vm145_vm0, %v83_v15  ;;  %v1563_v33 = vrot.slane %v1553_v27, %v119_v29  ;;  %v124_v11 = vrot.slane %v1553_v27, %v123_v62  ;;  %v132_v12 = vrot.slane %v1553_v27, %v131_v63 }
  0x42   :  { %237 = vmatprep.mubr.f32.mxu0 %v1445_v0  ;;  %332 = vmatprep.mubr.f32.mxu1 %v1445_v0 }
  0x43   :  { %381 = vmatprep.subr.mxu0 %v92_v16  ;;  %476 = vmatprep.subr.mxu1 %v94_v17  ;;  %v128_v17 = vrot.slane %v1553_v27, %v127_v5 }
  0x44   :  { %382 = vmatpush1.msra.mxu0 %v91_v18  ;;  %477 = vmatpush1.msra.mxu1 %v93_v19  ;;  %v136_v18 = vrot.slane %v1553_v27, %v135_v6 }
  0x45   :  { %1136 = vmatmul.mubr.msk.f32.gmra.mxu0 %vm145_vm0, %v84_v20  ;;  %1141 = vmatmul.mubr.msk.f32.gmra.mxu1 %vm145_vm0, %v84_v20 }
  0x46   :  { %243 = vmatprep.mubr.f32.mxu0 %v1445_v0  ;;  %338 = vmatprep.mubr.f32.mxu1 %v1445_v0 }
  0x49   :  { %1137 = vmatmul.mubr.msk.f32.gmra.mxu0 %vm145_vm0, %v85_v21  ;;  %1142 = vmatmul.mubr.msk.f32.gmra.mxu1 %vm145_vm0, %v85_v21 }
  0x4a   :  { %249 = vmatprep.mubr.f32.mxu0 %v1445_v0  ;;  %344 = vmatprep.mubr.f32.mxu1 %v1445_v0 }
  0x4d   :  { %1138 = vmatmul.mubr.msk.f32.gmra.mxu0 %vm145_vm0, %v86_v22  ;;  %1143 = vmatmul.mubr.msk.f32.gmra.mxu1 %vm145_vm0, %v86_v22 }
  0x4e   :  { %415 = vmatprep.mubr.f32.mxu0 %v1445_v0  ;;  %510 = vmatprep.mubr.f32.mxu1 %v1445_v0 }
  0x51   :  { %1144 = vmatmul.mubr.msk.f32.vlgmr.msra.gmra.mxu0 %vm145_vm0, %v82_v10  ;;  %1149 = vmatmul.mubr.msk.f32.vlgmr.msra.gmra.mxu1 %vm145_vm0, %v82_v10 }
  0x52   :  { %421 = vmatprep.mubr.f32.mxu0 %v1445_v0  ;;  %516 = vmatprep.mubr.f32.mxu1 %v1445_v0 }
  0x55   :  { %1145 = vmatmul.mubr.msk.f32.gmra.mxu0 %vm145_vm0, %v83_v15  ;;  %1150 = vmatmul.mubr.msk.f32.gmra.mxu1 %vm145_vm0, %v83_v15 }
  0x56   :  { %427 = vmatprep.mubr.f32.mxu0 %v1445_v0  ;;  %522 = vmatprep.mubr.f32.mxu1 %v1445_v0 }
  0x59   :  { %1146 = vmatmul.mubr.msk.f32.gmra.mxu0 %vm145_vm0, %v84_v20  ;;  %1151 = vmatmul.mubr.msk.f32.gmra.mxu1 %vm145_vm0, %v84_v20 }
  0x5a   :  { %433 = vmatprep.mubr.f32.mxu0 %v1445_v0  ;;  %528 = vmatprep.mubr.f32.mxu1 %v1445_v0 }
  0x5d   :  { %1147 = vmatmul.mubr.msk.f32.gmra.mxu0 %vm145_vm0, %v85_v21  ;;  %1152 = vmatmul.mubr.msk.f32.gmra.mxu1 %vm145_vm0, %v85_v21 }
  0x5e   :  { %439 = vmatprep.mubr.f32.mxu0 %v1445_v0  ;;  %534 = vmatprep.mubr.f32.mxu1 %v1445_v0 }
  0x61   :  { %1148 = vmatmul.mubr.msk.f32.gmra.mxu0 %vm145_vm0, %v86_v22  ;;  %1153 = vmatmul.mubr.msk.f32.gmra.mxu1 %vm145_vm0, %v86_v22 }
  0xfd   :  { %v227_v34 = vpop.f32.mrf.mxu0  ;;  %v322_v35 = vpop.f32.mrf.mxu1 }
  0xfe   :  { %v228_v36 = vadd.f32 %v227_v34, %v108_v30  ;;  %v323_v37 = vadd.f32 %v322_v35, %v116_v31 }
  0xff   :  { %v229_v38 = vpop.f32.mrf.mxu0  ;;  %v324_v39 = vpop.f32.mrf.mxu1 }
 0x100   :  { %541 = vst [vmem:[#allocation2] sm:$0xff] %v228_v36  ;;  %543 = vst [vmem:[#allocation2 + $0x10] sm:$0xff] %v323_v37  ;;  %v230_v40 = vadd.f32 %v229_v38, %v1560_v32  ;;  %v325_v41 = vadd.f32 %v324_v39, %v1563_v33 }
 0x101   :  { %v233_v42 = vpop.f32.mrf.mxu0  ;;  %v328_v43 = vpop.f32.mrf.mxu1 }
 0x102   :  { %542 = vst [vmem:[#allocation2 + $0x8] sm:$0xff] %v230_v40  ;;  %544 = vst [vmem:[#allocation2 + $0x18] sm:$0xff] %v325_v41  ;;  %v234_v44 = vadd.f32 %v233_v42, %v108_v30  ;;  %v329_v45 = vadd.f32 %v328_v43, %v116_v31 }
 0x103   :  { %v235_v46 = vpop.f32.mrf.mxu0  ;;  %v330_v47 = vpop.f32.mrf.mxu1 }
 0x104   :  { %549 = vst [vmem:[#allocation2 + $0x40] sm:$0xff] %v234_v44  ;;  %551 = vst [vmem:[#allocation2 + $0x50] sm:$0xff] %v329_v45  ;;  %v236_v48 = vadd.f32 %v235_v46, %v1560_v32  ;;  %v331_v49 = vadd.f32 %v330_v47, %v1563_v33 }
 0x105   :  { %v239_v50 = vpop.f32.mrf.mxu0  ;;  %v334_v51 = vpop.f32.mrf.mxu1 }
 0x106   :  { %550 = vst [vmem:[#allocation2 + $0x48] sm:$0xff] %v236_v48  ;;  %552 = vst [vmem:[#allocation2 + $0x58] sm:$0xff] %v331_v49  ;;  %v240_v52 = vadd.f32 %v239_v50, %v108_v30  ;;  %v335_v53 = vadd.f32 %v334_v51, %v116_v31 }
 0x107   :  { %v241_v54 = vpop.f32.mrf.mxu0  ;;  %v336_v55 = vpop.f32.mrf.mxu1 }
 0x108   :  { %557 = vst [vmem:[#allocation2 + $0x80] sm:$0xff] %v240_v52  ;;  %559 = vst [vmem:[#allocation2 + $0x90] sm:$0xff] %v335_v53  ;;  %v242_v56 = vadd.f32 %v241_v54, %v1560_v32  ;;  %v337_v57 = vadd.f32 %v336_v55, %v1563_v33 }
 0x109   :  { %v245_v58 = vpop.f32.mrf.mxu0  ;;  %v340_v59 = vpop.f32.mrf.mxu1 }
 0x10a   :  { %558 = vst [vmem:[#allocation2 + $0x88] sm:$0xff] %v242_v56  ;;  %560 = vst [vmem:[#allocation2 + $0x98] sm:$0xff] %v337_v57  ;;  %v246_v60 = vadd.f32 %v245_v58, %v108_v30  ;;  %v341_v61 = vadd.f32 %v340_v59, %v116_v31  ;;  %v1586_v59 = vmov 0.0  }
 0x10b   :  { %v247_v0 = vpop.f32.mrf.mxu0  ;;  %v342_v2 = vpop.f32.mrf.mxu1 }
 0x10c   :  { %565 = vst [vmem:[#allocation2 + $0xc0] sm:$0xff] %v246_v60  ;;  %567 = vst [vmem:[#allocation2 + $0xd0] sm:$0xff] %v341_v61  ;;  %v248_v3 = vadd.f32 %v247_v0, %v1560_v32  ;;  %v343_v4 = vadd.f32 %v342_v2, %v1563_v33  ;;  %v1588_v60 = vmov 0.0  }
 0x10d   :  { %v251_v7 = vpop.f32.mrf.mxu0  ;;  %v346_v8 = vpop.f32.mrf.mxu1 }
 0x10e   :  { %566 = vst [vmem:[#allocation2 + $0xc8] sm:$0xff] %v248_v3  ;;  %568 = vst [vmem:[#allocation2 + $0xd8] sm:$0xff] %v343_v4  ;;  %v252_v9 = vadd.f32 %v251_v7, %v108_v30  ;;  %v347_v10 = vadd.f32 %v346_v8, %v116_v31 }
 0x10f   :  { %v253_v13 = vpop.f32.mrf.mxu0  ;;  %v348_v14 = vpop.f32.mrf.mxu1 }
 0x110   :  { %573 = vst [vmem:[#allocation2 + $0x100] sm:$0xff] %v252_v9  ;;  %575 = vst [vmem:[#allocation2 + $0x110] sm:$0xff] %v347_v10  ;;  %v254_v15 = vadd.f32 %v253_v13, %v1560_v32  ;;  %v349_v16 = vadd.f32 %v348_v14, %v1563_v33 }
 0x111   :  { %v417_v19 = vpop.f32.mrf.mxu0  ;;  %v512_v20 = vpop.f32.mrf.mxu1 }
 0x112   :  { %574 = vst [vmem:[#allocation2 + $0x108] sm:$0xff] %v254_v15  ;;  %576 = vst [vmem:[#allocation2 + $0x118] sm:$0xff] %v349_v16  ;;  %v418_v21 = vadd.f32 %v417_v19, %v124_v11  ;;  %v513_v22 = vadd.f32 %v512_v20, %v132_v12 }
 0x113   :  { %v419_v23 = vpop.f32.mrf.mxu0  ;;  %v514_v24 = vpop.f32.mrf.mxu1 }
 0x114   :  { %545 = vst [vmem:[#allocation2 + $0x20] sm:$0xff] %v418_v21  ;;  %547 = vst [vmem:[#allocation2 + $0x30] sm:$0xff] %v513_v22  ;;  %v420_v25 = vadd.f32 %v419_v23, %v128_v17  ;;  %v515_v26 = vadd.f32 %v514_v24, %v136_v18 }
 0x115   :  { %v423_v28 = vpop.f32.mrf.mxu0  ;;  %v518_v29 = vpop.f32.mrf.mxu1 }
 0x116   :  { %546 = vst [vmem:[#allocation2 + $0x28] sm:$0xff] %v420_v25  ;;  %548 = vst [vmem:[#allocation2 + $0x38] sm:$0xff] %v515_v26  ;;  %v424_v30 = vadd.f32 %v423_v28, %v124_v11  ;;  %v519_v31 = vadd.f32 %v518_v29, %v132_v12 }
 0x117   :  { %v425_v32 = vpop.f32.mrf.mxu0  ;;  %v520_v27 = vpop.f32.mrf.mxu1 }
 0x118   :  { %553 = vst [vmem:[#allocation2 + $0x60] sm:$0xff] %v424_v30  ;;  %555 = vst [vmem:[#allocation2 + $0x70] sm:$0xff] %v519_v31  ;;  %v426_v33 = vadd.f32 %v425_v32, %v128_v17  ;;  %v521_v34 = vadd.f32 %v520_v27, %v136_v18 }
 0x119   :  { %v429_v35 = vpop.f32.mrf.mxu0  ;;  %v524_v36 = vpop.f32.mrf.mxu1 }
 0x11a   :  { %554 = vst [vmem:[#allocation2 + $0x68] sm:$0xff] %v426_v33  ;;  %556 = vst [vmem:[#allocation2 + $0x78] sm:$0xff] %v521_v34  ;;  %v430_v37 = vadd.f32 %v429_v35, %v124_v11  ;;  %v525_v38 = vadd.f32 %v524_v36, %v132_v12 }
 0x11b   :  { %v431_v39 = vpop.f32.mrf.mxu0  ;;  %v526_v40 = vpop.f32.mrf.mxu1 }
 0x11c   :  { %561 = vst [vmem:[#allocation2 + $0xa0] sm:$0xff] %v430_v37  ;;  %563 = vst [vmem:[#allocation2 + $0xb0] sm:$0xff] %v525_v38  ;;  %v432_v41 = vadd.f32 %v431_v39, %v128_v17  ;;  %v527_v42 = vadd.f32 %v526_v40, %v136_v18 }
 0x11d   :  { %v435_v43 = vpop.f32.mrf.mxu0  ;;  %v530_v44 = vpop.f32.mrf.mxu1 }
 0x11e   :  { %562 = vst [vmem:[#allocation2 + $0xa8] sm:$0xff] %v432_v41  ;;  %564 = vst [vmem:[#allocation2 + $0xb8] sm:$0xff] %v527_v42  ;;  %v436_v45 = vadd.f32 %v435_v43, %v124_v11  ;;  %v531_v46 = vadd.f32 %v530_v44, %v132_v12 }
 0x11f   :  { %v437_v47 = vpop.f32.mrf.mxu0  ;;  %v532_v48 = vpop.f32.mrf.mxu1 }
 0x120   :  { %569 = vst [vmem:[#allocation2 + $0xe0] sm:$0xff] %v436_v45  ;;  %571 = vst [vmem:[#allocation2 + $0xf0] sm:$0xff] %v531_v46  ;;  %v438_v49 = vadd.f32 %v437_v47, %v128_v17  ;;  %v533_v50 = vadd.f32 %v532_v48, %v136_v18 }
 0x121   :  { %v441_v51 = vpop.f32.mrf.mxu0  ;;  %v536_v52 = vpop.f32.mrf.mxu1 }
 0x122   :  { %570 = vst [vmem:[#allocation2 + $0xe8] sm:$0xff] %v438_v49  ;;  %572 = vst [vmem:[#allocation2 + $0xf8] sm:$0xff] %v533_v50  ;;  %v442_v53 = vadd.f32 %v441_v51, %v124_v11  ;;  %v537_v54 = vadd.f32 %v536_v52, %v132_v12  ;;  %1123 = sbr.rel (%p1154_p6) target bundleno = 612 (0x264), region = 63 }
 0x123   :  { %v443_v55 = vpop.f32.mrf.mxu0  ;;  %v538_v56 = vpop.f32.mrf.mxu1 }
 0x124   :  { %577 = vst [vmem:[#allocation2 + $0x120] sm:$0xff] %v442_v53  ;;  %579 = vst [vmem:[#allocation2 + $0x130] sm:$0xff] %v537_v54  ;;  %v444_v57 = vadd.f32 %v443_v55, %v128_v17  ;;  %v539_v58 = vadd.f32 %v538_v56, %v136_v18 }
 0x126   :  { %578 = vst [vmem:[#allocation2 + $0x128] sm:$0xff] %v444_v57  ;;  %580 = vst [vmem:[#allocation2 + $0x138] sm:$0xff] %v539_v58 }
 0x127   :  { %v1590_v61 = vmov 0.0   ;;  %v1592_v62 = vmov 0.0   ;;  %v1594_v63 = vmov 0.0   ;;  %v1596_v0 = vmov 0.0  }
 0x128 LB: > { %v655_v2 = vld [vmem:[#allocation10 + $0x1e8] sm:$0xff]  ;;  %v654_v3 = vld [vmem:[#allocation10 + $0x1e0] sm:$0xff]  ;;  %v1446_v6 = vmov 0.0   ;;  %v1076_v8 = vstv %s1425_s27  ;;  %v1447_v10 = vmov 0   ;;  %v657_v14 = vld [vmem:[#allocation10 + $0x1f8] sm:$0xff]  ;;  %s1155_s30 = sadd.s32 4294967295, %s1669_s0  ;;  %s1425_s27 = sphi %s1598_s27, %s585_s27   ;;  %v1421_v0 = vphi %v1596_v0, %v1678_v0   ;;  %v1417_v63 = vphi %v1594_v63, %v1086_v63   ;;  %v1413_v62 = vphi %v1592_v62, %v1677_v62   ;;  %v1409_v61 = vphi %v1590_v61, %v1093_v61  }
 0x129   : > { %v651_v4 = vld [vmem:[#allocation10 + $0x1c8] sm:$0xff]  ;;  %658 = vmatprep.subr.mxu0 %v655_v2  ;;  %v650_v5 = vld [vmem:[#allocation10 + $0x1c0] sm:$0xff]  ;;  %722 = vmatprep.mubr.f32.mxu0 %v1446_v6  ;;  %vm1077_vm1 = vcmp.lt.s32.totalorder %v1076_v8, %v1506_v1  ;;  %v656_v16 = vld [vmem:[#allocation10 + $0x1f0] sm:$0xff]  ;;  %s1628_s8 = ssub.s32 %s1155_s30, %s1425_s27  ;;  %s1166_s9 = sshll.u32 %s1425_s27, 6 }
 0x12a   : > { %659 = vmatpush1.msra.mxu0 %v654_v3  ;;  %v647_v7 = vld [vmem:[#allocation10 + $0x1a8] sm:$0xff]  ;;  %793 = vmatprep.mubr.f32.mxu1 %v1446_v6  ;;  %v646_v9 = vld [vmem:[#allocation10 + $0x1a0] sm:$0xff]  ;;  %v1080_v12 = vsel %vm1077_vm1, 1, %v1447_v10  ;;  %v653_v18 = vld [vmem:[#allocation10 + $0x1d8] sm:$0xff]  ;;  %s1008_s10 = scalar_lea.vmem [#allocation2], %s1166_s9  ;;  %s1167_s11 = sshll.u32 %s1628_s8, 6 }
 0x12b   : > { %660 = vmatprep.subr.mxu0 %v651_v4  ;;  %1238 = vset.pattern.permute.xlu0 %v1447_v10  ;;  %v643_v11 = vld [vmem:[#allocation10 + $0x188] sm:$0xff]  ;;  %v642_v13 = vld [vmem:[#allocation10 + $0x180] sm:$0xff]  ;;  %v652_v19 = vld [vmem:[#allocation10 + $0x1d0] sm:$0xff]  ;;  %s1019_s12 = scalar_lea.vmem [#allocation2], %s1167_s11  ;;  %s585_s27 = sadd.s32 1, %s1425_s27  }
 0x12c   : > { %661 = vmatpush1.msra.mxu0 %v650_v5  ;;  %1082 = vperm.xlu0 %1238, %v1080_v12   ;;  %v639_v15 = vld [vmem:[#allocation10 + $0x168] sm:$0xff]  ;;  %v638_v17 = vld [vmem:[#allocation10 + $0x160] sm:$0xff]  ;;  %v649_v21 = vld [vmem:[#allocation10 + $0x1b8] sm:$0xff]  ;;  %p584_p7 = scmp.ge.s32.totalorder %s585_s27, %s1669_s0 }
 0x12d   : > { %662 = vmatprep.subr.mxu0 %v647_v7  ;;  %729 = vmatprep.subr.mxu1 %v657_v14  ;;  %v635_v20 = vld [vmem:[#allocation10 + $0x148] sm:$0xff]  ;;  %v634_v22 = vld [vmem:[#allocation10 + $0x140] sm:$0xff]  ;;  %v648_v23 = vld [vmem:[#allocation10 + $0x1b0] sm:$0xff] }
 0x12e   : > { %663 = vmatpush1.msra.mxu0 %v646_v9  ;;  %730 = vmatpush1.msra.mxu1 %v656_v16  ;;  %v645_v24 = vld [vmem:[#allocation10 + $0x198] sm:$0xff]  ;;  %v631_v25 = vld [vmem:[#allocation10 + $0x128] sm:$0xff]  ;;  %v644_v26 = vld [vmem:[#allocation10 + $0x190] sm:$0xff] }
 0x12f   : > { %664 = vmatprep.subr.mxu0 %v643_v11  ;;  %731 = vmatprep.subr.mxu1 %v653_v18  ;;  %v630_v28 = vld [vmem:[#allocation10 + $0x120] sm:$0xff]  ;;  %v641_v29 = vld [vmem:[#allocation10 + $0x178] sm:$0xff]  ;;  %v627_v30 = vld [vmem:[#allocation10 + $0x108] sm:$0xff] }
 0x130   : > { %665 = vmatpush1.msra.mxu0 %v642_v13  ;;  %732 = vmatpush1.msra.mxu1 %v652_v19  ;;  %v640_v31 = vld [vmem:[#allocation10 + $0x170] sm:$0xff]  ;;  %v626_v32 = vld [vmem:[#allocation10 + $0x100] sm:$0xff]  ;;  %v637_v27 = vld [vmem:[#allocation10 + $0x158] sm:$0xff] }
 0x131   : > { %666 = vmatprep.subr.mxu0 %v639_v15  ;;  %733 = vmatprep.subr.mxu1 %v649_v21  ;;  %v623_v33 = vld [vmem:[#allocation10 + $0xe8] sm:$0xff]  ;;  %v636_v34 = vld [vmem:[#allocation10 + $0x150] sm:$0xff]  ;;  %v622_v35 = vld [vmem:[#allocation10 + $0xe0] sm:$0xff] }
 0x132   : > { %667 = vmatpush1.msra.mxu0 %v638_v17  ;;  %734 = vmatpush1.msra.mxu1 %v648_v23  ;;  %v633_v36 = vld [vmem:[#allocation10 + $0x138] sm:$0xff]  ;;  %v619_v37 = vld [vmem:[#allocation10 + $0xc8] sm:$0xff]  ;;  %v632_v38 = vld [vmem:[#allocation10 + $0x130] sm:$0xff] }
 0x133   : > { %668 = vmatprep.subr.mxu0 %v635_v20  ;;  %735 = vmatprep.subr.mxu1 %v645_v24  ;;  %v618_v39 = vld [vmem:[#allocation10 + $0xc0] sm:$0xff]  ;;  %v629_v40 = vld [vmem:[#allocation10 + $0x118] sm:$0xff]  ;;  %v615_v41 = vld [vmem:[#allocation10 + $0xa8] sm:$0xff] }
 0x134   : > { %669 = vmatpush1.msra.mxu0 %v634_v22  ;;  %736 = vmatpush1.msra.mxu1 %v644_v26  ;;  %v628_v42 = vld [vmem:[#allocation10 + $0x110] sm:$0xff]  ;;  %v614_v43 = vld [vmem:[#allocation10 + $0xa0] sm:$0xff]  ;;  %v625_v44 = vld [vmem:[#allocation10 + $0xf8] sm:$0xff] }
 0x135   : > { %670 = vmatprep.subr.mxu0 %v631_v25  ;;  %737 = vmatprep.subr.mxu1 %v641_v29  ;;  %v611_v45 = vld [vmem:[#allocation10 + $0x88] sm:$0xff]  ;;  %v624_v46 = vld [vmem:[#allocation10 + $0xf0] sm:$0xff]  ;;  %v610_v47 = vld [vmem:[#allocation10 + $0x80] sm:$0xff] }
 0x136   : > { %671 = vmatpush1.msra.mxu0 %v630_v28  ;;  %738 = vmatpush1.msra.mxu1 %v640_v31  ;;  %v621_v48 = vld [vmem:[#allocation10 + $0xd8] sm:$0xff]  ;;  %v607_v49 = vld [vmem:[#allocation10 + $0x68] sm:$0xff]  ;;  %v620_v50 = vld [vmem:[#allocation10 + $0xd0] sm:$0xff] }
 0x137   : > { %672 = vmatprep.subr.mxu0 %v627_v30  ;;  %739 = vmatprep.subr.mxu1 %v637_v27  ;;  %v606_v51 = vld [vmem:[#allocation10 + $0x60] sm:$0xff]  ;;  %v617_v52 = vld [vmem:[#allocation10 + $0xb8] sm:$0xff]  ;;  %v603_v53 = vld [vmem:[#allocation10 + $0x48] sm:$0xff] }
 0x138   : > { %673 = vmatpush1.msra.mxu0 %v626_v32  ;;  %740 = vmatpush1.msra.mxu1 %v636_v34  ;;  %v616_v54 = vld [vmem:[#allocation10 + $0xb0] sm:$0xff]  ;;  %v602_v55 = vld [vmem:[#allocation10 + $0x40] sm:$0xff]  ;;  %v613_v56 = vld [vmem:[#allocation10 + $0x98] sm:$0xff] }
 0x139   : > { %674 = vmatprep.subr.mxu0 %v623_v33  ;;  %741 = vmatprep.subr.mxu1 %v633_v36  ;;  %v599_v57 = vld [vmem:[#allocation10 + $0x28] sm:$0xff]  ;;  %v612_v58 = vld [vmem:[#allocation10 + $0x90] sm:$0xff]  ;;  %v598_v59 = vld [vmem:[#allocation10 + $0x20] sm:$0xff] }
 0x13a   : > { %675 = vmatpush1.msra.mxu0 %v622_v35  ;;  %742 = vmatpush1.msra.mxu1 %v632_v38  ;;  %v609_v60 = vld [vmem:[#allocation10 + $0x78] sm:$0xff]  ;;  %v595_v2 = vld [vmem:[#allocation10 + $0x8] sm:$0xff]  ;;  %v608_v3 = vld [vmem:[#allocation10 + $0x70] sm:$0xff] }
 0x13b   : > { %676 = vmatprep.subr.mxu0 %v619_v37  ;;  %743 = vmatprep.subr.mxu1 %v629_v40  ;;  %v594_v4 = vld [vmem:[#allocation10] sm:$0xff]  ;;  %v605_v5 = vld [vmem:[#allocation10 + $0x58] sm:$0xff]  ;;  %v861_v7 = vld [vmem:[#allocation11 + $0x1e8] sm:$0xff] }
 0x13c   : > { %677 = vmatpush1.msra.mxu0 %v618_v39  ;;  %744 = vmatpush1.msra.mxu1 %v628_v42  ;;  %v860_v8 = vld [vmem:[#allocation11 + $0x1e0] sm:$0xff]  ;;  %v604_v9 = vld [vmem:[#allocation10 + $0x50] sm:$0xff]  ;;  %v857_v11 = vld [vmem:[#allocation11 + $0x1c8] sm:$0xff] }
 0x13d   : > { %678 = vmatprep.subr.mxu0 %v615_v41  ;;  %745 = vmatprep.subr.mxu1 %v625_v44  ;;  %v601_v12 = vld [vmem:[#allocation10 + $0x38] sm:$0xff]  ;;  %v856_v13 = vld [vmem:[#allocation11 + $0x1c0] sm:$0xff]  ;;  %v600_v14 = vld [vmem:[#allocation10 + $0x30] sm:$0xff] }
 0x13e   : > { %679 = vmatpush1.msra.mxu0 %v614_v43  ;;  %746 = vmatpush1.msra.mxu1 %v624_v46  ;;  %v853_v15 = vld [vmem:[#allocation11 + $0x1a8] sm:$0xff]  ;;  %v597_v16 = vld [vmem:[#allocation10 + $0x18] sm:$0xff]  ;;  %v852_v17 = vld [vmem:[#allocation11 + $0x1a0] sm:$0xff] }
 0x13f   : > { %680 = vmatprep.subr.mxu0 %v611_v45  ;;  %747 = vmatprep.subr.mxu1 %v621_v48  ;;  %v596_v18 = vld [vmem:[#allocation10 + $0x10] sm:$0xff]  ;;  %v849_v19 = vld [vmem:[#allocation11 + $0x188] sm:$0xff]  ;;  %v863_v20 = vld [vmem:[#allocation11 + $0x1f8] sm:$0xff] }
 0x140   : > { %681 = vmatpush1.msra.mxu0 %v610_v47  ;;  %748 = vmatpush1.msra.mxu1 %v620_v50  ;;  %v848_v21 = vld [vmem:[#allocation11 + $0x180] sm:$0xff]  ;;  %v845_v22 = vld [vmem:[#allocation11 + $0x168] sm:$0xff]  ;;  %v862_v23 = vld [vmem:[#allocation11 + $0x1f0] sm:$0xff] }
 0x141   : > { %682 = vmatprep.subr.mxu0 %v607_v49  ;;  %749 = vmatprep.subr.mxu1 %v617_v52  ;;  %v844_v24 = vld [vmem:[#allocation11 + $0x160] sm:$0xff]  ;;  %v859_v25 = vld [vmem:[#allocation11 + $0x1d8] sm:$0xff]  ;;  %v841_v26 = vld [vmem:[#allocation11 + $0x148] sm:$0xff] }
 0x142   : > { %683 = vmatpush1.msra.mxu0 %v606_v51  ;;  %750 = vmatpush1.msra.mxu1 %v616_v54  ;;  %v858_v28 = vld [vmem:[#allocation11 + $0x1d0] sm:$0xff]  ;;  %v840_v29 = vld [vmem:[#allocation11 + $0x140] sm:$0xff]  ;;  %v855_v30 = vld [vmem:[#allocation11 + $0x1b8] sm:$0xff] }
 0x143   : > { %684 = vmatprep.subr.mxu0 %v603_v53  ;;  %751 = vmatprep.subr.mxu1 %v613_v56  ;;  %v837_v31 = vld [vmem:[#allocation11 + $0x128] sm:$0xff]  ;;  %v854_v32 = vld [vmem:[#allocation11 + $0x1b0] sm:$0xff]  ;;  %v836_v27 = vld [vmem:[#allocation11 + $0x120] sm:$0xff] }
 0x144   : > { %685 = vmatpush1.msra.mxu0 %v602_v55  ;;  %752 = vmatpush1.msra.mxu1 %v612_v58  ;;  %v851_v33 = vld [vmem:[#allocation11 + $0x198] sm:$0xff]  ;;  %v833_v34 = vld [vmem:[#allocation11 + $0x108] sm:$0xff]  ;;  %v850_v35 = vld [vmem:[#allocation11 + $0x190] sm:$0xff] }
 0x145   : > { %686 = vmatprep.subr.mxu0 %v599_v57  ;;  %753 = vmatprep.subr.mxu1 %v609_v60  ;;  %v832_v36 = vld [vmem:[#allocation11 + $0x100] sm:$0xff]  ;;  %v847_v37 = vld [vmem:[#allocation11 + $0x178] sm:$0xff]  ;;  %v829_v38 = vld [vmem:[#allocation11 + $0xe8] sm:$0xff] }
 0x146   : > { %687 = vmatpush1.msra.mxu0 %v598_v59  ;;  %754 = vmatpush1.msra.mxu1 %v608_v3  ;;  %v846_v39 = vld [vmem:[#allocation11 + $0x170] sm:$0xff]  ;;  %v828_v40 = vld [vmem:[#allocation11 + $0xe0] sm:$0xff]  ;;  %v843_v41 = vld [vmem:[#allocation11 + $0x158] sm:$0xff] }
 0x147   : > { %688 = vmatprep.subr.mxu0 %v595_v2  ;;  %755 = vmatprep.subr.mxu1 %v605_v5  ;;  %v825_v42 = vld [vmem:[#allocation11 + $0xc8] sm:$0xff]  ;;  %v842_v43 = vld [vmem:[#allocation11 + $0x150] sm:$0xff]  ;;  %v824_v44 = vld [vmem:[#allocation11 + $0xc0] sm:$0xff] }
 0x148   : > { %689 = vmatpush1.msra.mxu0 %v594_v4  ;;  %756 = vmatpush1.msra.mxu1 %v604_v9  ;;  %v839_v45 = vld [vmem:[#allocation11 + $0x138] sm:$0xff]  ;;  %v821_v46 = vld [vmem:[#allocation11 + $0xa8] sm:$0xff]  ;;  %v838_v47 = vld [vmem:[#allocation11 + $0x130] sm:$0xff]  ;;  %v1078_v4 = vstv %s1628_s8 }
 0x149   : > { %723 = vmatmul.mubr.f32.vlgmr.msra.gmra.mxu0 %v1421_v0  ;;  %864 = vmatprep.subr.mxu0 %v861_v7  ;;  %v820_v48 = vld [vmem:[#allocation11 + $0xa0] sm:$0xff]  ;;  %v835_v49 = vld [vmem:[#allocation11 + $0x118] sm:$0xff]  ;;  %v817_v50 = vld [vmem:[#allocation11 + $0x88] sm:$0xff]  ;;  %vm1079_vm2 = vcmp.lt.s32.totalorder %v1078_v4, %v1506_v1 }
 0x14a   : > { %865 = vmatpush1.msra.mxu0 %v860_v8  ;;  %757 = vmatprep.subr.mxu1 %v601_v12  ;;  %v816_v51 = vld [vmem:[#allocation11 + $0x80] sm:$0xff]  ;;  %v834_v52 = vld [vmem:[#allocation11 + $0x110] sm:$0xff]  ;;  %v813_v53 = vld [vmem:[#allocation11 + $0x68] sm:$0xff] }
 0x14b   : > { %866 = vmatprep.subr.mxu0 %v857_v11  ;;  %758 = vmatpush1.msra.mxu1 %v600_v14  ;;  %v831_v54 = vld [vmem:[#allocation11 + $0xf8] sm:$0xff]  ;;  %v812_v55 = vld [vmem:[#allocation11 + $0x60] sm:$0xff]  ;;  %v830_v56 = vld [vmem:[#allocation11 + $0xf0] sm:$0xff] }
 0x14c   : > { %867 = vmatpush1.msra.mxu0 %v856_v13  ;;  %759 = vmatprep.subr.mxu1 %v597_v16  ;;  %v809_v57 = vld [vmem:[#allocation11 + $0x48] sm:$0xff]  ;;  %v827_v58 = vld [vmem:[#allocation11 + $0xd8] sm:$0xff]  ;;  %v808_v59 = vld [vmem:[#allocation11 + $0x40] sm:$0xff]  ;;  %v1087_v16 = vsel %vm1079_vm2, 1, %v1447_v10 }
 0x14d   : > { %868 = vmatprep.subr.mxu0 %v853_v15  ;;  %760 = vmatpush1.msra.mxu1 %v596_v18  ;;  %v826_v60 = vld [vmem:[#allocation11 + $0xd0] sm:$0xff]  ;;  %v805_v2 = vld [vmem:[#allocation11 + $0x28] sm:$0xff]  ;;  %v823_v3 = vld [vmem:[#allocation11 + $0xb8] sm:$0xff] }
 0x14e   : > { %869 = vmatpush1.msra.mxu0 %v852_v17  ;;  %935 = vmatprep.subr.mxu1 %v863_v20  ;;  %v804_v5 = vld [vmem:[#allocation11 + $0x20] sm:$0xff]  ;;  %v822_v7 = vld [vmem:[#allocation11 + $0xb0] sm:$0xff]  ;;  %v801_v8 = vld [vmem:[#allocation11 + $0x8] sm:$0xff] }
 0x14f   : > { %870 = vmatprep.subr.mxu0 %v849_v19  ;;  %794 = vmatmul.mubr.f32.vlgmr.msra.gmra.mxu1 %v1421_v0  ;;  %v819_v9 = vld [vmem:[#allocation11 + $0x98] sm:$0xff]  ;;  %v800_v11 = vld [vmem:[#allocation11] sm:$0xff]  ;;  %v818_v12 = vld [vmem:[#allocation11 + $0x90] sm:$0xff] }
 0x150   : > { %871 = vmatpush1.msra.mxu0 %v848_v21  ;;  %936 = vmatpush1.msra.mxu1 %v862_v23  ;;  %v815_v13 = vld [vmem:[#allocation11 + $0x78] sm:$0xff]  ;;  %v814_v14 = vld [vmem:[#allocation11 + $0x70] sm:$0xff]  ;;  %v1010_v23 = vld [vmem:[%s1008_s10 + $0x8] sm:$0xff] }
 0x151   : > { %872 = vmatprep.subr.mxu0 %v845_v22  ;;  %937 = vmatprep.subr.mxu1 %v859_v25  ;;  %v811_v15 = vld [vmem:[#allocation11 + $0x58] sm:$0xff]  ;;  %v810_v17 = vld [vmem:[#allocation11 + $0x50] sm:$0xff] }
 0x152   : > { %873 = vmatpush1.msra.mxu0 %v844_v24  ;;  %938 = vmatpush1.msra.mxu1 %v858_v28  ;;  %v807_v18 = vld [vmem:[#allocation11 + $0x38] sm:$0xff]  ;;  %v806_v19 = vld [vmem:[#allocation11 + $0x30] sm:$0xff] }
 0x153   : > { %874 = vmatprep.subr.mxu0 %v841_v26  ;;  %939 = vmatprep.subr.mxu1 %v855_v30  ;;  %v803_v20 = vld [vmem:[#allocation11 + $0x18] sm:$0xff]  ;;  %v802_v21 = vld [vmem:[#allocation11 + $0x10] sm:$0xff] }
 0x154   : > { %875 = vmatpush1.msra.mxu0 %v840_v29  ;;  %940 = vmatpush1.msra.mxu1 %v854_v32  ;;  %v1009_v10 = vld [vmem:[%s1008_s10] sm:$0xff]  ;;  %v1012_v30 = vld [vmem:[%s1008_s10 + $0x18] sm:$0xff] }
 0x155   : > { %876 = vmatprep.subr.mxu0 %v837_v31  ;;  %941 = vmatprep.subr.mxu1 %v851_v33 }
 0x156   : > { %877 = vmatpush1.msra.mxu0 %v836_v27  ;;  %942 = vmatpush1.msra.mxu1 %v850_v35  ;;  %v1011_v27 = vld [vmem:[%s1008_s10 + $0x10] sm:$0xff] }
 0x157   : > { %878 = vmatprep.subr.mxu0 %v833_v34  ;;  %943 = vmatprep.subr.mxu1 %v847_v37 }
 0x158   : > { %879 = vmatpush1.msra.mxu0 %v832_v36  ;;  %944 = vmatpush1.msra.mxu1 %v846_v39  ;;  %v1020_v39 = vld [vmem:[%s1019_s12 + $0x20] sm:$0xff] }
 0x159   : > { %880 = vmatprep.subr.mxu0 %v829_v38  ;;  %945 = vmatprep.subr.mxu1 %v843_v41 }
 0x15a   : > { %881 = vmatpush1.msra.mxu0 %v828_v40  ;;  %946 = vmatpush1.msra.mxu1 %v842_v43  ;;  %v1021_v43 = vld [vmem:[%s1019_s12 + $0x28] sm:$0xff] }
 0x15b   : > { %882 = vmatprep.subr.mxu0 %v825_v42  ;;  %947 = vmatprep.subr.mxu1 %v839_v45 }
 0x15c   : > { %883 = vmatpush1.msra.mxu0 %v824_v44  ;;  %948 = vmatpush1.msra.mxu1 %v838_v47 }
 0x15d   : > { %884 = vmatprep.subr.mxu0 %v821_v46  ;;  %949 = vmatprep.subr.mxu1 %v835_v49 }
 0x15e   : > { %885 = vmatpush1.msra.mxu0 %v820_v48  ;;  %928 = vmatprep.mubr.f32.mxu0 %v1446_v6 }
 0x15f   : > { %886 = vmatprep.subr.mxu0 %v817_v50  ;;  %950 = vmatpush1.msra.mxu1 %v834_v52 }
 0x160   : > { %887 = vmatpush1.msra.mxu0 %v816_v51  ;;  %951 = vmatprep.subr.mxu1 %v831_v54 }
 0x161   : > { %888 = vmatprep.subr.mxu0 %v813_v53  ;;  %952 = vmatpush1.msra.mxu1 %v830_v56 }
 0x162   : > { %889 = vmatpush1.msra.mxu0 %v812_v55  ;;  %953 = vmatprep.subr.mxu1 %v827_v58 }
 0x163   : > { %890 = vmatprep.subr.mxu0 %v809_v57  ;;  %954 = vmatpush1.msra.mxu1 %v826_v60  ;;  %v1023_v57 = vld [vmem:[%s1019_s12 + $0x38] sm:$0xff] }
 0x164   : > { %891 = vmatpush1.msra.mxu0 %v808_v59  ;;  %955 = vmatprep.subr.mxu1 %v823_v3  ;;  %v1022_v59 = vld [vmem:[%s1019_s12 + $0x30] sm:$0xff] }
 0x165   : > { %892 = vmatprep.subr.mxu0 %v805_v2  ;;  %956 = vmatpush1.msra.mxu1 %v822_v7 }
 0x166   : > { %893 = vmatpush1.msra.mxu0 %v804_v5  ;;  %957 = vmatprep.subr.mxu1 %v819_v9 }
 0x167   : > { %894 = vmatprep.subr.mxu0 %v801_v8  ;;  %958 = vmatpush1.msra.mxu1 %v818_v12 }
 0x168   : > { %895 = vmatpush1.msra.mxu0 %v800_v11  ;;  %959 = vmatprep.subr.mxu1 %v815_v13 }
 0x169   : > { %929 = vmatmul.mubr.f32.vlgmr.msra.gmra.mxu0 %v1413_v62  ;;  %960 = vmatpush1.msra.mxu1 %v814_v14 }
 0x16a   : > { %999 = vmatprep.mubr.f32.mxu1 %v1446_v6  ;;  %961 = vmatprep.subr.mxu1 %v811_v15 }
 0x16b   : > { %1089 = vperm.xlu0 %1238, %v1087_v16   ;;  %962 = vmatpush1.msra.mxu1 %v810_v17 }
 0x16c   : > { %963 = vmatprep.subr.mxu1 %v807_v18 }
 0x16d   : > { %964 = vmatpush1.msra.mxu1 %v806_v19 }
 0x16e   : > { %965 = vmatprep.subr.mxu1 %v803_v20 }
 0x16f   : > { %966 = vmatpush1.msra.mxu1 %v802_v21 }
 0x170   : > { %1000 = vmatmul.mubr.f32.vlgmr.msra.gmra.mxu1 %v1413_v62 }
 0x1a7   : > { %v1083_v50 = vpop.permute.xlu0 %1082 }
 0x1a8   : > { %vm1084_vm3 = vcmp.eq.s32.totalorder %v1083_v50, 1 }
 0x1e6   : > { %v1090_v17 = vpop.permute.xlu0 %1089 }
 0x1e7   : > { %vm1091_vm4 = vcmp.eq.s32.totalorder %v1090_v17, 1 }
 0x209   : > { %v724_v22 = vpop.f32.mrf.mxu0 }
 0x20a   : > { %v1013_v24 = vadd.f32 %v1009_v10, %v724_v22 }
 0x20b   : > { %v726_v25 = vpop.f32.mrf.mxu0 }
 0x20c   : > { %v1160_v6 = vmul.f32 -1.442695, %v1013_v24  ;;  %v1014_v26 = vadd.f32 %v1010_v23, %v726_v25 }
 0x20e   : > { %1239 = vpow2.f32 %v1160_v6  ;;  %v1161_v28 = vmul.f32 -1.442695, %v1014_v26 }
 0x20f   : > { %v795_v29 = vpop.f32.mrf.mxu1 }
 0x210   : > { %1241 = vpow2.f32 %v1161_v28  ;;  %v1015_v34 = vadd.f32 %v1011_v27, %v795_v29 }
 0x211   : > { %v797_v31 = vpop.f32.mrf.mxu1 }
 0x212   : > { %v1016_v32 = vadd.f32 %v1012_v30, %v797_v31 }
 0x214   : > { %v1162_v33 = vmul.f32 -1.442695, %v1016_v32 }
 0x216   : > { %1243 = vpow2.f32 %v1162_v33 }
 0x217   : > { %1245 = vtanh.f32 %v1015_v34 }
 0x21b   : > { %v1240_v35 = vpop.eup %1239 }
 0x21c   : > { %v1031_v36 = vadd.f32 1.0, %v1240_v35 }
 0x21d   : > { %v1242_v37 = vpop.eup %1241 }
 0x21e   : > { %1247 = vrcp.f32 %v1031_v36  ;;  %v1037_v38 = vadd.f32 1.0, %v1242_v37 }
 0x220   : > { %1249 = vrcp.f32 %v1037_v38 }
 0x223   : > { %v1244_v40 = vpop.eup %1243 }
 0x224   : > { %v1246_v41 = vpop.eup %1245  ;;  %v1044_v46 = vadd.f32 1.0, %v1244_v40 }
 0x229   : > { %v930_v42 = vpop.f32.mrf.mxu0 }
 0x22a   : > { %v1024_v44 = vadd.f32 %v1020_v39, %v930_v42 }
 0x22b   : > { %v1248_v45 = vpop.eup %1247  ;;  %v932_v47 = vpop.f32.mrf.mxu0 }
 0x22c   : > { %v1163_v48 = vmul.f32 -1.442695, %v1024_v44  ;;  %v1025_v49 = vadd.f32 %v1021_v43, %v932_v47  ;;  %v1048_v51 = vmul.f32 %v1248_v45, %v1246_v41 }
 0x22d   : > { %v1250_v52 = vpop.eup %1249 }
 0x22e   : > { %1251 = vpow2.f32 %v1163_v48  ;;  %v1164_v53 = vmul.f32 -1.442695, %v1025_v49  ;;  %v1047_v54 = vmul.f32 %v1417_v63, %v1250_v52 }
 0x22f   : > { %1253 = vrcp.f32 %v1044_v46 }
 0x230   : > { %1255 = vpow2.f32 %v1164_v53  ;;  %v1049_v55 = vadd.f32 %v1048_v51, %v1047_v54  ;;  %v1001_v56 = vpop.f32.mrf.mxu1 }
 0x231   : > { %v1026_v2 = vadd.f32 %v1022_v59, %v1001_v56 }
 0x232   : > { %1257 = vtanh.f32 %v1049_v55  ;;  %v1086_v63 = vsel %vm1084_vm3, %v1049_v55, %v1417_v63   ;;  %v1003_v58 = vpop.f32.mrf.mxu1 }
 0x233   : > { %v1027_v60 = vadd.f32 %v1023_v57, %v1003_v58  ;;  %1259 = vtanh.f32 %v1026_v2 }
 0x235   : > { %v1165_v3 = vmul.f32 -1.442695, %v1027_v60 }
 0x237   : > { %1261 = vpow2.f32 %v1165_v3 }
 0x23b   : > { %v1252_v4 = vpop.eup %1251 }
 0x23c   : > { %v1254_v5 = vpop.eup %1253  ;;  %v1055_v7 = vadd.f32 1.0, %v1252_v4 }
 0x23d   : > { %v1256_v8 = vpop.eup %1255 }
 0x23e   : > { %1263 = vrcp.f32 %v1055_v7  ;;  %v1061_v9 = vadd.f32 1.0, %v1256_v8 }
 0x23f   : > { %v1258_v11 = vpop.eup %1257 }
 0x240   : > { %1265 = vrcp.f32 %v1061_v9  ;;  %v1051_v12 = vmul.f32 %v1258_v11, %v1254_v5  ;;  %v1260_v14 = vpop.eup %1259 }
 0x242   : > { %v1085_v13 = vsel %vm1084_vm3, %v1051_v12, %v1421_v0  }
 0x243   : > { %v1678_v0 = vmov %v1085_v13  ;;  %v1680_v60 = vmov (%p584_p7), %v1085_v13 }
 0x244   : > { %v1262_v15 = vpop.eup %1261 }
 0x245   : > { %v1068_v19 = vadd.f32 1.0, %v1262_v15 }
 0x247   : > { %1267 = vrcp.f32 %v1068_v19 }
 0x24b   : > { %v1264_v16 = vpop.eup %1263 }
 0x24c   : > { %v1072_v21 = vmul.f32 %v1264_v16, %v1260_v14 }
 0x24d   : > { %v1266_v18 = vpop.eup %1265 }
 0x24e   : > { %v1071_v20 = vmul.f32 %v1409_v61, %v1266_v18 }
 0x250   : > { %v1073_v10 = vadd.f32 %v1072_v21, %v1071_v20 }
 0x252   : > { %1269 = vtanh.f32 %v1073_v10  ;;  %v1093_v61 = vsel %vm1091_vm4, %v1073_v10, %v1409_v61  }
 0x254   : > { %v1268_v22 = vpop.eup %1267 }
 0x25f   : > { %v1270_v23 = vpop.eup %1269  ;;  %587 = sbr.rel (!%p584_p7) target bundleno = 296 (0x128), region = 69 }
 0x260   : > { %v1075_v24 = vmul.f32 %v1270_v23, %v1268_v22 }
 0x262   : > { %v1092_v25 = vsel %vm1091_vm4, %v1075_v24, %v1413_v62  }
 0x263   : > { %v1677_v62 = vmov %v1092_v25  ;;  %v1679_v59 = vmov (%p584_p7), %v1092_v25 }
 0x264 PF:  { %1094 = vst [vmem:[#allocation13] sm:$0xff] %v1433_v60  ;;  %1095 = vst [vmem:[#allocation13 + $0x8] sm:$0xff] %v1429_v59  ;;  %s1448_s15 = smov [#allocation13]   ;;  %v1433_v60 = vphi %v1588_v60, %v1680_v60   ;;  %v1429_v59 = vphi %v1586_v59, %v1679_v59  }
 0x265   :  { %s1102_s16 = sshll.u32 %s1448_s15, 4  ;;  %s1103_s16 = int_to_ptr.vmem [resolvable:$true] %s1102_s16 }
 0x266   :  { %s1351_s3 = scalar_lea.vmem %s1103_s16, 256  ;;  %p1356_p9 = scmp.lt.s32.totalorder %s1103_s16, %s1103_s16 }
 0x267   :  { %p1352_p8 = scmp.ne.s32.totalorder %s1103_s16, %s1351_s3  ;;  %p1357_p10 = scmp.lt.s32.totalorder %s1351_s3, %s1351_s3 }
 0x269   :  { %p1358_p11 = por %p1357_p10, %p1356_p9 }
 0x26b   :  { %p1359_p12 = pnand %p1358_p11, %p1352_p8 }
 0x26d   :  { %1362 = shalt.err (!%p1359_p12)
}
 0x26e   :  { %1105 = dma.vmem_to_hbm [thread:$0]  %s1103_s16, 256, %s1676_s7, [#allocation7]  }
 0x26f   :  { %1405 = dma.done.wait [#allocation7], 256  }
 0x270   :  { %1406 = vsyncadd [#allocation7], 4294967040 }
 0x271   :  { %1109 = vsyncpa [#allocation6], 1 }
 0x272   :  { %1110 = vsyncpa [#allocation9], 1 }
 0x273   :  { %1111 = vsyncpa [#allocation12], 1 }
 0x274   :  { %1112 = vsyncpa [#allocation7], 1 }

</bundles_post_ra>
